<compile_context>
chip_gen: v5e
topology: v5e:2x2
jax: 0.10.0
libtpu: 0.0.40
codegen_flags: <defaults>
</compile_context>

<pallas_src>
import functools

import jax
import jax.numpy as jnp
import numpy as np
from jax.experimental import pallas as pl
from jax.experimental.pallas import tpu as pltpu

EPS = 1e-5  # nn.InstanceNorm2d default eps (affine=False, biased variance)


# ---------------------------------------------------------------------------
# In-kernel helpers
# ---------------------------------------------------------------------------
def _reflect_taps(x, masks, H, W):
    """Nine 3x3-window taps of `x` (shape (Cp, H*W), row-major spatial) with
    PyTorch 'reflect' (pad=1) boundary handling.

    Tap t corresponds to (dy, dx) = (t // 3 - 1, t % 3 - 1) = (ky - 1, kx - 1).
    Shifts use pltpu.roll (XLU lane rotation); every wrapped position is a
    boundary position and is replaced by the reflect select, so wraps never leak.
    """
    is_top, is_bot, is_left, is_right = masks
    HW = H * W

    r_dn = pltpu.roll(x, HW - W, axis=1)   # value of row h+1 (interior rows)
    r_up = pltpu.roll(x, W, axis=1)        # value of row h-1 (interior rows)
    rows = (
        jnp.where(is_top, r_dn, r_up),     # dy = -1: reflect at h=0   -> row 1
        x,                                 # dy =  0
        jnp.where(is_bot, r_up, r_dn),     # dy = +1: reflect at h=H-1 -> row H-2
    )

    taps = []
    for v in rows:
        c_rt = pltpu.roll(v, HW - 1, axis=1)   # value of col w+1 (interior cols)
        c_lt = pltpu.roll(v, 1, axis=1)        # value of col w-1 (interior cols)
        taps.append(jnp.where(is_left, c_rt, c_lt))    # dx = -1 (reflect at w=0)
        taps.append(v)                                  # dx =  0
        taps.append(jnp.where(is_right, c_lt, c_rt))    # dx = +1 (reflect at w=W-1)
    return taps


def _conv3x3_instnorm(x, w_mat, masks, H, W, relu, mm_dtype):
    """3x3 conv (stride 1, reflect pad 1, no bias) + InstanceNorm (+ optional ReLU).

    x      : (Cp, H*W) f32
    w_mat  : (Cp, 9*Cp) array in mm_dtype; column order (tap, c_in), tap = ky*3+kx.
    Single MXU matmul over the stacked taps; f32 accumulation and statistics.
    """
    HW = H * W
    C = x.shape[0]

    taps = _reflect_taps(x, masks, H, W)                       # 9 x (Cp, HW) f32
    stk = jnp.concatenate(taps, axis=0).astype(mm_dtype)       # (9*Cp, HW)
    y = jnp.dot(w_mat, stk, preferred_element_type=jnp.float32)  # (Cp, HW) f32

    # Fused one-pass biased mean / variance: one reduce over the [y; y*y] stack.
    # (The conv bias is omitted upstream because this mean subtraction cancels it.)
    inv_hw = 1.0 / HW
    s = jnp.sum(jnp.concatenate([y, y * y], axis=0), axis=-1, keepdims=True)  # (2Cp,1)
    mean = s[:C] * inv_hw
    var = jnp.maximum(s[C:] * inv_hw - mean * mean, 0.0)
    y = (y - mean) * jax.lax.rsqrt(var + EPS)
    return jnp.maximum(y, 0.0) if relu else y


def _res_block_kernel(mask_ref, x_ref, w1_ref, w2_ref, out_ref, *, H, W):
    # x_ref: (nb, Cp, H*W) — nb images; channels on sublanes, spatial on lanes.
    nb, C, HW = x_ref.shape

    # Boundary masks: precomputed (4, HW) int32 table -> broadcast/compare once
    # per grid step and reused by both convs and all nb images.
    m = mask_ref[...]
    masks = tuple(jnp.broadcast_to(m[i:i + 1, :], (C, HW)) != 0 for i in range(4))

    w1 = w1_ref[...]   # (Cp, 9*Cp), loaded once per step
    w2 = w2_ref[...]

    for j in range(nb):  # static unroll over the images in this block
        x = x_ref[j]
        y1 = _conv3x3_instnorm(x, w1, masks, H, W, relu=True, mm_dtype=w1.dtype)
        y2 = _conv3x3_instnorm(y1, w2, masks, H, W, relu=False, mm_dtype=w2.dtype)
        out_ref[j] = x + y2                                    # residual add


# ---------------------------------------------------------------------------
# Wrapper
# ---------------------------------------------------------------------------
def _pick_nb(n, max_nb=8):
    """Largest images-per-grid-step dividing n while keeping >= 2 grid steps
    (so an even/parallel grid keeps both v7x TensorCores busy)."""
    best = 1
    for d in range(1, min(n, max_nb) + 1):
        if n % d == 0 and n // d >= 2:
            best = d
    return best


@functools.partial(jax.jit, static_argnames=("mm_dtype",))
def res_block_forward(x, w1, b1, w2, b2, mm_dtype=jnp.bfloat16):
    """ResBlock(in_channels=C, kernel_size=3, stride=1, padding=1, padding_mode='reflect').

    b1 / b2 are accepted for interface parity with nn.Conv2d but are mathematically
    cancelled by InstanceNorm(affine=False), so they are not fed to the kernel.
    """
    del b1, b2
    N, C, H, W = x.shape
    HW = H * W
    assert w1.shape == (C, C, 3, 3) and w2.shape == (C, C, 3, 3)
    assert HW % 128 == 0, "flattened spatial dim must be a multiple of 128 lanes"

    nb = _pick_nb(N)
    Cp = ((C + 7) // 8) * 8   # pad channels so all sublane concats/slices are aligned

    # (C_out, C_in, 3, 3) -> (Cp, 9*Cp) tap-major: column = t*Cp + c_in, t = ky*3+kx,
    # matching the in-kernel tap-stack order; padded rows/cols are zero.
    def prep_w(w):
        wp = jnp.zeros((Cp, Cp, 3, 3), w.dtype).at[:C, :C].set(w)
        return jnp.transpose(wp, (0, 2, 3, 1)).reshape(Cp, 9 * Cp).astype(mm_dtype)

    w1t, w2t = prep_w(w1), prep_w(w2)
    xf = jnp.pad(x.reshape(N, C, HW), ((0, 0), (0, Cp - C), (0, 0)))

    # Reflect-padding boundary masks, rows = (top, bottom, left, right).
    pos = jnp.arange(HW, dtype=jnp.int32)
    col = pos % W
    masks = jnp.stack(
        [pos < W, pos >= (H - 1) * W, col == 0, col == W - 1]).astype(jnp.int32)

    kernel = functools.partial(_res_block_kernel, H=H, W=W)
    wbytes = 2 * Cp * 9 * Cp * jnp.dtype(mm_dtype).itemsize
    cost = pl.CostEstimate(
        flops=N * (2 * 2 * 9 * Cp * Cp * HW + 24 * Cp * HW),  # 2 fused convs + elementwise
        transcendentals=2 * N * Cp,                           # one rsqrt per (image, channel, conv)
        bytes_accessed=4 * (2 * N * Cp * HW + 4 * HW) + wbytes,
    )

    out = pl.pallas_call(
        kernel,
        out_shape=jax.ShapeDtypeStruct((N, Cp, HW), jnp.float32),
        grid_spec=pltpu.PrefetchScalarGridSpec(
            num_scalar_prefetch=0,
            grid=(N // nb,),
            in_specs=[
                # Constant-index blocks (masks / weights) are fetched once; at large C
                # add pipeline_mode=pl.Buffered(1) here to drop their second buffer.
                pl.BlockSpec((4, HW), lambda n: (0, 0)),           # boundary masks
                pl.BlockSpec((nb, Cp, HW), lambda n: (n, 0, 0)),   # nb input images
                pl.BlockSpec((Cp, 9 * Cp), lambda n: (0, 0)),      # conv1 weight
                pl.BlockSpec((Cp, 9 * Cp), lambda n: (0, 0)),      # conv2 weight
            ],
            out_specs=pl.BlockSpec((nb, Cp, HW), lambda n: (n, 0, 0)),
        ),
        compiler_params=pltpu.CompilerParams(dimension_semantics=("parallel",)),
        cost_estimate=cost,
    )(masks, xf, w1t, w2t)
    return out[:, :C].reshape(N, C, H, W)


# ---------------------------------------------------------------------------
# Pure-JAX reference (mirrors the PyTorch module semantics, including bias)
# ---------------------------------------------------------------------------
def _ref_forward(x, w1, b1, w2, b2, padding=1):
    def convblock(h, w, b, relu):
        hp = jnp.pad(h, ((0, 0), (0, 0), (padding, padding), (padding, padding)),
                     mode="reflect")
        y = jax.lax.conv_general_dilated(
            hp, w, (1, 1), "VALID", dimension_numbers=("NCHW", "OIHW", "NCHW"))
        y = y + b.reshape(1, -1, 1, 1)
        mean = y.mean(axis=(2, 3), keepdims=True)
        var = ((y - mean) ** 2).mean(axis=(2, 3), keepdims=True)
        y = (y - mean) / jnp.sqrt(var + EPS)
        return jnp.maximum(y, 0.0) if relu else y

    h = convblock(x, w1, b1, True)
    h = convblock(h, w2, b2, False)
    return x + h


# ---------------------------------------------------------------------------
if __name__ == "__main__":
    N, C, H, W = 2, 4, 16, 16
    K = 3  # ResBlock(in_channels=4, kernel_size=3, stride=1, padding=1)

    key = jax.random.PRNGKey(0)
    kx, kw1, kb1, kw2, kb2 = jax.random.split(key, 5)
    x = jax.random.normal(kx, (N, C, H, W), dtype=jnp.float32)
    fan_in = C * K * K
    w1 = jax.random.normal(kw1, (C, C, K, K), dtype=jnp.float32) / np.sqrt(fan_in)
    b1 = jax.random.normal(kb1, (C,), dtype=jnp.float32) * 0.1
    w2 = jax.random.normal(kw2, (C, C, K, K), dtype=jnp.float32) / np.sqrt(fan_in)
    b2 = jax.random.normal(kb2, (C,), dtype=jnp.float32) * 0.1

    ref = jax.block_until_ready(_ref_forward(x, w1, b1, w2, b2))

    # f32-operand path: exact structural parity with the PyTorch module.
    out_f32 = jax.block_until_ready(
        res_block_forward(x, w1, b1, w2, b2, mm_dtype=jnp.float32))
    np.testing.assert_allclose(np.asarray(out_f32), np.asarray(ref),
                               rtol=2e-3, atol=2e-3)

    # Default bf16-operand MXU path (f32 accumulation / InstanceNorm statistics).
    out_bf16 = jax.block_until_ready(res_block_forward(x, w1, b1, w2, b2))
    np.testing.assert_allclose(np.asarray(out_bf16), np.asarray(ref),
                               rtol=3e-2, atol=3e-2)

    print("KERNEL_OK")
</pallas_src>

<mosaic_0001>
module attributes {stable_mosaic.version = 11 : i64} {
  func.func @_res_block_kernel(%arg0: i32, %arg1: memref<4x256xi32, #tpu.memory_space<vmem>>, %arg2: memref<1x8x256xf32, #tpu.memory_space<vmem>>, %arg3: memref<8x72xf32, #tpu.memory_space<vmem>>, %arg4: memref<8x72xf32, #tpu.memory_space<vmem>>, %arg5: memref<1x8x256xf32, #tpu.memory_space<vmem>>) attributes {dimension_semantics = [#tpu.dimension_semantics<parallel>], iteration_bounds = array<i64: 2>, scalar_prefetch = 0 : i64, scratch_operands = 0 : i64, tpu.core_type = #tpu.core_type<tc>, window_params = [{pipeline_mode = #tpu.pipeline_mode<synchronous>, transform_indices = @transform_0, window_bounds = array<i64: 4, 256>}, {transform_indices = @transform_1, window_bounds = array<i64: 1, 8, 256>}, {pipeline_mode = #tpu.pipeline_mode<synchronous>, transform_indices = @transform_2, window_bounds = array<i64: 8, 72>}, {pipeline_mode = #tpu.pipeline_mode<synchronous>, transform_indices = @transform_3, window_bounds = array<i64: 8, 72>}, {transform_indices = @transform_4, window_bounds = array<i64: 1, 8, 256>}]} {
    %c0 = arith.constant 0 : index
    %c0_0 = arith.constant 0 : index
    %0 = vector.load %arg1[%c0, %c0_0] : memref<4x256xi32, #tpu.memory_space<vmem>>, vector<4x256xi32>
    %1 = vector.extract_strided_slice %0 {offsets = [0, 0], sizes = [1, 256], strides = [1, 1]} : vector<4x256xi32> to vector<1x256xi32>
    %2 = vector.shape_cast %1 : vector<1x256xi32> to vector<1x256xi32>
    %3 = vector.broadcast %2 : vector<1x256xi32> to vector<8x256xi32>
    %c0_i32 = arith.constant 0 : i32
    %4 = vector.broadcast %c0_i32 : i32 to vector<8x256xi32>
    %5 = arith.cmpi ne, %3, %4 : vector<8x256xi32>
    %6 = vector.extract_strided_slice %0 {offsets = [1, 0], sizes = [1, 256], strides = [1, 1]} : vector<4x256xi32> to vector<1x256xi32>
    %7 = vector.shape_cast %6 : vector<1x256xi32> to vector<1x256xi32>
    %8 = vector.broadcast %7 : vector<1x256xi32> to vector<8x256xi32>
    %c0_i32_1 = arith.constant 0 : i32
    %9 = vector.broadcast %c0_i32_1 : i32 to vector<8x256xi32>
    %10 = arith.cmpi ne, %8, %9 : vector<8x256xi32>
    %11 = vector.extract_strided_slice %0 {offsets = [2, 0], sizes = [1, 256], strides = [1, 1]} : vector<4x256xi32> to vector<1x256xi32>
    %12 = vector.shape_cast %11 : vector<1x256xi32> to vector<1x256xi32>
    %13 = vector.broadcast %12 : vector<1x256xi32> to vector<8x256xi32>
    %c0_i32_2 = arith.constant 0 : i32
    %14 = vector.broadcast %c0_i32_2 : i32 to vector<8x256xi32>
    %15 = arith.cmpi ne, %13, %14 : vector<8x256xi32>
    %16 = vector.extract_strided_slice %0 {offsets = [3, 0], sizes = [1, 256], strides = [1, 1]} : vector<4x256xi32> to vector<1x256xi32>
    %17 = vector.shape_cast %16 : vector<1x256xi32> to vector<1x256xi32>
    %18 = vector.broadcast %17 : vector<1x256xi32> to vector<8x256xi32>
    %c0_i32_3 = arith.constant 0 : i32
    %19 = vector.broadcast %c0_i32_3 : i32 to vector<8x256xi32>
    %20 = arith.cmpi ne, %18, %19 : vector<8x256xi32>
    %c0_4 = arith.constant 0 : index
    %c0_5 = arith.constant 0 : index
    %21 = vector.load %arg3[%c0_4, %c0_5] : memref<8x72xf32, #tpu.memory_space<vmem>>, vector<8x72xf32>
    %c0_6 = arith.constant 0 : index
    %c0_7 = arith.constant 0 : index
    %22 = vector.load %arg4[%c0_6, %c0_7] : memref<8x72xf32, #tpu.memory_space<vmem>>, vector<8x72xf32>
    %c0_8 = arith.constant 0 : index
    %c0_9 = arith.constant 0 : index
    %c0_10 = arith.constant 0 : index
    %23 = vector.load %arg2[%c0_8, %c0_9, %c0_10] : memref<1x8x256xf32, #tpu.memory_space<vmem>>, vector<1x8x256xf32>
    %24 = vector.shape_cast %23 : vector<1x8x256xf32> to vector<8x256xf32>
    %c240_i32 = arith.constant 240 : i32
    %25 = tpu.dynamic_rotate %24 by %c240_i32 dim 1 : vector<8x256xf32>, i32 -> vector<8x256xf32>
    %c16_i32 = arith.constant 16 : i32
    %26 = tpu.dynamic_rotate %24 by %c16_i32 dim 1 : vector<8x256xf32>, i32 -> vector<8x256xf32>
    %27 = arith.select %5, %25, %26 : vector<8x256xi1>, vector<8x256xf32>
    %28 = arith.select %10, %26, %25 : vector<8x256xi1>, vector<8x256xf32>
    %c255_i32 = arith.constant 255 : i32
    %29 = tpu.dynamic_rotate %27 by %c255_i32 dim 1 : vector<8x256xf32>, i32 -> vector<8x256xf32>
    %c1_i32 = arith.constant 1 : i32
    %30 = tpu.dynamic_rotate %27 by %c1_i32 dim 1 : vector<8x256xf32>, i32 -> vector<8x256xf32>
    %31 = arith.select %15, %29, %30 : vector<8x256xi1>, vector<8x256xf32>
    %32 = arith.select %20, %30, %29 : vector<8x256xi1>, vector<8x256xf32>
    %c255_i32_11 = arith.constant 255 : i32
    %33 = tpu.dynamic_rotate %24 by %c255_i32_11 dim 1 : vector<8x256xf32>, i32 -> vector<8x256xf32>
    %c1_i32_12 = arith.constant 1 : i32
    %34 = tpu.dynamic_rotate %24 by %c1_i32_12 dim 1 : vector<8x256xf32>, i32 -> vector<8x256xf32>
    %35 = arith.select %15, %33, %34 : vector<8x256xi1>, vector<8x256xf32>
    %36 = arith.select %20, %34, %33 : vector<8x256xi1>, vector<8x256xf32>
    %c255_i32_13 = arith.constant 255 : i32
    %37 = tpu.dynamic_rotate %28 by %c255_i32_13 dim 1 : vector<8x256xf32>, i32 -> vector<8x256xf32>
    %c1_i32_14 = arith.constant 1 : i32
    %38 = tpu.dynamic_rotate %28 by %c1_i32_14 dim 1 : vector<8x256xf32>, i32 -> vector<8x256xf32>
    %39 = arith.select %15, %37, %38 : vector<8x256xi1>, vector<8x256xf32>
    %40 = arith.select %20, %38, %37 : vector<8x256xi1>, vector<8x256xf32>
    %41 = tpu.concatenate %31, %27, %32, %35, %24, %36, %39, %28, %40 in 0 : vector<8x256xf32>, vector<8x256xf32>, vector<8x256xf32>, vector<8x256xf32>, vector<8x256xf32>, vector<8x256xf32>, vector<8x256xf32>, vector<8x256xf32>, vector<8x256xf32> -> vector<72x256xf32>
    %cst = arith.constant dense<0.000000e+00> : vector<8x256xf32>
    %42 = tpu.matmul %21, %41, %cst {dimension_numbers = #tpu.dot_dimension_numbers<[1], [0], [0], [1], [0, 0, 1, 1], [], []>} : vector<8x72xf32>, vector<72x256xf32>, vector<8x256xf32> -> vector<8x256xf32>
    %43 = arith.mulf %42, %42 : vector<8x256xf32>
    %44 = tpu.concatenate %42, %43 in 0 : vector<8x256xf32>, vector<8x256xf32> -> vector<16x256xf32>
    %cst_15 = arith.constant dense<0.000000e+00> : vector<16xf32>
    %45 = vector.multi_reduction <add>, %44, %cst_15 [1] : vector<16x256xf32> to vector<16xf32>
    %46 = vector.shape_cast %45 : vector<16xf32> to vector<16x1xf32>
    %47 = vector.extract_strided_slice %46 {offsets = [0, 0], sizes = [8, 1], strides = [1, 1]} : vector<16x1xf32> to vector<8x1xf32>
    %cst_16 = arith.constant 3.906250e-03 : f32
    %48 = vector.broadcast %cst_16 : f32 to vector<8x1xf32>
    %49 = arith.mulf %47, %48 : vector<8x1xf32>
    %50 = vector.extract_strided_slice %46 {offsets = [8, 0], sizes = [8, 1], strides = [1, 1]} : vector<16x1xf32> to vector<8x1xf32>
    %cst_17 = arith.constant 3.906250e-03 : f32
    %51 = vector.broadcast %cst_17 : f32 to vector<8x1xf32>
    %52 = arith.mulf %50, %51 : vector<8x1xf32>
    %53 = arith.mulf %49, %49 : vector<8x1xf32>
    %54 = arith.subf %52, %53 : vector<8x1xf32>
    %cst_18 = arith.constant 0.000000e+00 : f32
    %55 = vector.broadcast %cst_18 : f32 to vector<8x1xf32>
    %56 = arith.maximumf %54, %55 : vector<8x1xf32>
    %57 = vector.broadcast %49 : vector<8x1xf32> to vector<8x256xf32>
    %58 = arith.subf %42, %57 : vector<8x256xf32>
    %cst_19 = arith.constant 9.99999974E-6 : f32
    %59 = vector.broadcast %cst_19 : f32 to vector<8x1xf32>
    %60 = arith.addf %56, %59 : vector<8x1xf32>
    %61 = math.rsqrt %60 : vector<8x1xf32>
    %62 = vector.broadcast %61 : vector<8x1xf32> to vector<8x256xf32>
    %63 = arith.mulf %58, %62 : vector<8x256xf32>
    %cst_20 = arith.constant 0.000000e+00 : f32
    %64 = vector.broadcast %cst_20 : f32 to vector<8x256xf32>
    %65 = arith.maximumf %63, %64 : vector<8x256xf32>
    %c240_i32_21 = arith.constant 240 : i32
    %66 = tpu.dynamic_rotate %65 by %c240_i32_21 dim 1 : vector<8x256xf32>, i32 -> vector<8x256xf32>
    %c16_i32_22 = arith.constant 16 : i32
    %67 = tpu.dynamic_rotate %65 by %c16_i32_22 dim 1 : vector<8x256xf32>, i32 -> vector<8x256xf32>
    %68 = arith.select %5, %66, %67 : vector<8x256xi1>, vector<8x256xf32>
    %69 = arith.select %10, %67, %66 : vector<8x256xi1>, vector<8x256xf32>
    %c255_i32_23 = arith.constant 255 : i32
    %70 = tpu.dynamic_rotate %68 by %c255_i32_23 dim 1 : vector<8x256xf32>, i32 -> vector<8x256xf32>
    %c1_i32_24 = arith.constant 1 : i32
    %71 = tpu.dynamic_rotate %68 by %c1_i32_24 dim 1 : vector<8x256xf32>, i32 -> vector<8x256xf32>
    %72 = arith.select %15, %70, %71 : vector<8x256xi1>, vector<8x256xf32>
    %73 = arith.select %20, %71, %70 : vector<8x256xi1>, vector<8x256xf32>
    %c255_i32_25 = arith.constant 255 : i32
    %74 = tpu.dynamic_rotate %65 by %c255_i32_25 dim 1 : vector<8x256xf32>, i32 -> vector<8x256xf32>
    %c1_i32_26 = arith.constant 1 : i32
    %75 = tpu.dynamic_rotate %65 by %c1_i32_26 dim 1 : vector<8x256xf32>, i32 -> vector<8x256xf32>
    %76 = arith.select %15, %74, %75 : vector<8x256xi1>, vector<8x256xf32>
    %77 = arith.select %20, %75, %74 : vector<8x256xi1>, vector<8x256xf32>
    %c255_i32_27 = arith.constant 255 : i32
    %78 = tpu.dynamic_rotate %69 by %c255_i32_27 dim 1 : vector<8x256xf32>, i32 -> vector<8x256xf32>
    %c1_i32_28 = arith.constant 1 : i32
    %79 = tpu.dynamic_rotate %69 by %c1_i32_28 dim 1 : vector<8x256xf32>, i32 -> vector<8x256xf32>
    %80 = arith.select %15, %78, %79 : vector<8x256xi1>, vector<8x256xf32>
    %81 = arith.select %20, %79, %78 : vector<8x256xi1>, vector<8x256xf32>
    %82 = tpu.concatenate %72, %68, %73, %76, %65, %77, %80, %69, %81 in 0 : vector<8x256xf32>, vector<8x256xf32>, vector<8x256xf32>, vector<8x256xf32>, vector<8x256xf32>, vector<8x256xf32>, vector<8x256xf32>, vector<8x256xf32>, vector<8x256xf32> -> vector<72x256xf32>
    %cst_29 = arith.constant dense<0.000000e+00> : vector<8x256xf32>
    %83 = tpu.matmul %22, %82, %cst_29 {dimension_numbers = #tpu.dot_dimension_numbers<[1], [0], [0], [1], [0, 0, 1, 1], [], []>} : vector<8x72xf32>, vector<72x256xf32>, vector<8x256xf32> -> vector<8x256xf32>
    %84 = arith.mulf %83, %83 : vector<8x256xf32>
    %85 = tpu.concatenate %83, %84 in 0 : vector<8x256xf32>, vector<8x256xf32> -> vector<16x256xf32>
    %cst_30 = arith.constant dense<0.000000e+00> : vector<16xf32>
    %86 = vector.multi_reduction <add>, %85, %cst_30 [1] : vector<16x256xf32> to vector<16xf32>
    %87 = vector.shape_cast %86 : vector<16xf32> to vector<16x1xf32>
    %88 = vector.extract_strided_slice %87 {offsets = [0, 0], sizes = [8, 1], strides = [1, 1]} : vector<16x1xf32> to vector<8x1xf32>
    %cst_31 = arith.constant 3.906250e-03 : f32
    %89 = vector.broadcast %cst_31 : f32 to vector<8x1xf32>
    %90 = arith.mulf %88, %89 : vector<8x1xf32>
    %91 = vector.extract_strided_slice %87 {offsets = [8, 0], sizes = [8, 1], strides = [1, 1]} : vector<16x1xf32> to vector<8x1xf32>
    %cst_32 = arith.constant 3.906250e-03 : f32
    %92 = vector.broadcast %cst_32 : f32 to vector<8x1xf32>
    %93 = arith.mulf %91, %92 : vector<8x1xf32>
    %94 = arith.mulf %90, %90 : vector<8x1xf32>
    %95 = arith.subf %93, %94 : vector<8x1xf32>
    %cst_33 = arith.constant 0.000000e+00 : f32
    %96 = vector.broadcast %cst_33 : f32 to vector<8x1xf32>
    %97 = arith.maximumf %95, %96 : vector<8x1xf32>
    %98 = vector.broadcast %90 : vector<8x1xf32> to vector<8x256xf32>
    %99 = arith.subf %83, %98 : vector<8x256xf32>
    %cst_34 = arith.constant 9.99999974E-6 : f32
    %100 = vector.broadcast %cst_34 : f32 to vector<8x1xf32>
    %101 = arith.addf %97, %100 : vector<8x1xf32>
    %102 = math.rsqrt %101 : vector<8x1xf32>
    %103 = vector.broadcast %102 : vector<8x1xf32> to vector<8x256xf32>
    %104 = arith.mulf %99, %103 : vector<8x256xf32>
    %105 = arith.addf %24, %104 : vector<8x256xf32>
    %c0_35 = arith.constant 0 : index
    %c0_36 = arith.constant 0 : index
    %c0_37 = arith.constant 0 : index
    %106 = vector.load %arg5[%c0_35, %c0_36, %c0_37] : memref<1x8x256xf32, #tpu.memory_space<vmem>>, vector<1x8x256xf32>
    %107 = vector.shape_cast %106 : vector<1x8x256xf32> to vector<8x256xf32>
    %108 = vector.shape_cast %105 : vector<8x256xf32> to vector<1x8x256xf32>
    tpu.vector_store %arg5[%c0_35, %c0_36, %c0_37], %108 {strides = array<i32>} : memref<1x8x256xf32, #tpu.memory_space<vmem>>, vector<1x8x256xf32>,
    return
  }
  func.func @transform_0(%arg0: i32) -> (i32, i32) {
    %c0_i32 = arith.constant 0 : i32
    %c0_i32_0 = arith.constant 0 : i32
    %c0_i32_1 = arith.constant 0 : i32
    return %c0_i32, %c0_i32_0 : i32, i32
  }
  func.func @transform_1(%arg0: i32) -> (i32, i32, i32) {
    %c0_i32 = arith.constant 0 : i32
    %c0_i32_0 = arith.constant 0 : i32
    %c0_i32_1 = arith.constant 0 : i32
    return %arg0, %c0_i32, %c0_i32_0 : i32, i32, i32
  }
  func.func @transform_2(%arg0: i32) -> (i32, i32) {
    %c0_i32 = arith.constant 0 : i32
    %c0_i32_0 = arith.constant 0 : i32
    %c0_i32_1 = arith.constant 0 : i32
    return %c0_i32, %c0_i32_0 : i32, i32
  }
  func.func @transform_3(%arg0: i32) -> (i32, i32) {
    %c0_i32 = arith.constant 0 : i32
    %c0_i32_0 = arith.constant 0 : i32
    %c0_i32_1 = arith.constant 0 : i32
    return %c0_i32, %c0_i32_0 : i32, i32
  }
  func.func @transform_4(%arg0: i32) -> (i32, i32, i32) {
    %c0_i32 = arith.constant 0 : i32
    %c0_i32_0 = arith.constant 0 : i32
    %c0_i32_1 = arith.constant 0 : i32
    return %arg0, %c0_i32, %c0_i32_0 : i32, i32, i32
  }
}

</mosaic_0001>

<bundles_post_ra>
// kernel: res_block_forward.1
= control target key start
LH: loop header
LB: loop body
LE: loop exit
PB: predicated region body
PF: predicated region fallthrough
CT: control target
= control target key end

     0   :  { %s715_s15 = smov 0   ;;  %s968_s0 = inlined_call_operand.vmem [shape: s32[4,256], index: 0, kind: input, shape index: {}]   ;;  %s969_s1 = inlined_call_operand.vmem [shape: f32[2,8,256], index: 1, kind: input, shape index: {}]   ;;  %s970_s2 = inlined_call_operand.vmem [shape: f32[8,72], index: 2, kind: input, shape index: {}]   ;;  %s971_s3 = inlined_call_operand.vmem [shape: f32[8,72], index: 3, kind: input, shape index: {}]   ;;  %s972_s4 = inlined_call_operand.vmem [shape: f32[2,8,256], index: 4, kind: output, shape index: {}]  }
   0x1 LB: > { %s565_s16 = sadd.s32 4294967295, %s684_s15   ;;  %p569_p0 = scmp.ge.s32.totalorder %s684_s15, 1  ;;  %s684_s15 = sphi %s715_s15, %s14_s15  }
   0x2   : > { %p162_p1 = scmp.lt.s32.totalorder %s684_s15, 3 }
   0x4   : > { %p163_p2 = pnand %p569_p0, %p162_p1 }
   0x5   : > { %p188_p3 = scmp.lt.s32.totalorder (!%p163_p2), %s565_s16, 1  ;;  %s686_s21 = smov (!%p163_p2), 112  }
   0x6   : > { %166 = sbr.rel (%p163_p2) target bundleno = 1129 (0x469), region = 36  ;;  %s687_s22 = smov (!%p163_p2), 16  }
   0x7   : > { %s688_s25 = smov (!%p163_p2), 127   ;;  %s689_s26 = smov (!%p163_p2), 1  }
   0xb   : > { %s974_s16 = smov (!%p188_p3, %s565_s16), 1  ;;  %v742_v3 = vld [vmem:[%s968_s0] sm:$0xff]  ;;  %v231_v7 = vlaneseq  ;;  %vm297_vm12 = vcmask 588800  }
   0xc   : > { %s580_s17 = sshll.u32 %s974_s16, 4  ;;  %v205_v5 = vperm.slane %v742_v3, 1  ;;  %v206_v6 = vperm.slane %v742_v3, 5  ;;  %v199_v8 = vperm.slane %v742_v3, 0  ;;  %v200_v9 = vperm.slane %v742_v3, 4 }
   0xd   : > { %s192_s20 = scalar_lea.vmem %s969_s1, %s580_s17  ;;  %v753_v12 = vand.u32 127, %v231_v7  ;;  %v217_v32 = vperm.slane %v742_v3, 3  ;;  %v218_v33 = vperm.slane %v742_v3, 7  ;;  %v211_v37 = vperm.slane %v742_v3, 2  ;;  %s197_s7 = scalar_lea.vmem %s972_s4, %s580_s17 }
   0xe   : > { %v731_v0 = vld [vmem:[%s192_s20] sm:$0xff]  ;;  %v733_v1 = vld [vmem:[%s192_s20 + $0x8] sm:$0xff]  ;;  %v749_v10 = vperm.slane %v205_v5, 1  ;;  %v751_v11 = vperm.slane %v206_v6, 1  ;;  %v755_v13 = vperm.slane %v199_v8, 0  ;;  %v757_v14 = vperm.slane %v200_v9, 0 }
   0xf   : > { %v594_v2 = vpack.i.bf16 %v733_v1, %v731_v0  ;;  %vm233_vm2 = vcmp.lt.s32.totalorder %v753_v12, 112  ;;  %vm240_vm3 = vcmp.lt.s32.totalorder %v753_v12, 16  ;;  %v794_v35 = vperm.slane %v217_v32, 3 }
  0x10   : > { %vm209_vm0 = vcmp.ne.s32.totalorder %v749_v10, 0  ;;  %vm210_vm1 = vcmp.ne.s32.totalorder %v751_v11, 0  ;;  %vm203_vm4 = vcmp.ne.s32.totalorder %v755_v13, 0  ;;  %vm204_vm5 = vcmp.ne.s32.totalorder %v757_v14, 0 }
  0x11   : > { %595 = vrot.lane.b32.xlu0 %v594_v2, %s686_s21  ;;  %615 = vrot.lane.b32.xlu2 %v594_v2, %s688_s25  ;;  %v796_v36 = vperm.slane %v218_v33, 3  ;;  %v212_v38 = vperm.slane %v742_v3, 6  ;;  %vm251_vm6 = vcmp.lt.s32.totalorder %v753_v12, 127  ;;  %vm258_vm7 = vcmp.lt.s32.totalorder %v753_v12, 1 }
  0x12   : > { %vm221_vm8 = vcmp.ne.s32.totalorder %v794_v35, 0  ;;  %v804_v48 = vperm.slane %v211_v37, 2 }
  0x13   : > { %vm222_vm9 = vcmp.ne.s32.totalorder %v796_v36, 0  ;;  %v806_v49 = vperm.slane %v212_v38, 2 }
  0x14   : > { %vm215_vm10 = vcmp.ne.s32.totalorder %v804_v48, 0 }
  0x15   : > { %vm216_vm11 = vcmp.ne.s32.totalorder %v806_v49, 0 }
  0x19   : > { %600 = vrot.lane.b32.xlu0 %v594_v2, %s687_s22  ;;  %620 = vrot.lane.b32.xlu2 %v594_v2, %s689_s26 }
  0x6b   : > { %v616_v30 = vpop.permute.xlu2 %615 }
  0x6c   : > { %v618_v41 = vunpack.i.h.bf16 %v616_v30  ;;  %v617_v42 = vunpack.i.l.bf16 %v616_v30 }
  0x6e   : > { %v269_v56 = vsel %vm251_vm6, %v617_v42, %v618_v41  ;;  %v270_v58 = vsel %vm251_vm6, %v618_v41, %v617_v42 }
  0x73   : > { %v621_v34 = vpop.permute.xlu2 %620 }
  0x74   : > { %v623_v44 = vunpack.i.h.bf16 %v621_v34  ;;  %v622_v45 = vunpack.i.l.bf16 %v621_v34 }
  0x76   : > { %v276_v57 = vsel %vm258_vm7, %v623_v44, %v622_v45  ;;  %v275_v59 = vsel %vm258_vm7, %v622_v45, %v623_v44 }
  0x77   : > { %v280_v5 = vsel %vm222_vm9, %v275_v59, %v270_v58 }
  0x83   : > { %v596_v4 = vpop.permute.xlu0 %595 }
  0x84   : > { %v598_v15 = vunpack.i.h.bf16 %v596_v4  ;;  %v597_v16 = vunpack.i.l.bf16 %v596_v4  ;;  %v279_v4 = vsel %vm221_vm8, %v276_v57, %v269_v56 }
  0x86   : > { %v234_v20 = vsel %vm233_vm2, %v597_v16, %v598_v15  ;;  %v235_v21 = vsel %vm233_vm2, %v598_v15, %v597_v16  ;;  %v277_v15 = vsel %vm215_vm10, %v269_v56, %v276_v57  ;;  %v278_v16 = vsel %vm216_vm11, %v270_v58, %v275_v59 }
  0x8b   : > { %v601_v17 = vpop.permute.xlu0 %600 }
  0x8c   : > { %v603_v18 = vunpack.i.h.bf16 %v601_v17  ;;  %v602_v19 = vunpack.i.l.bf16 %v601_v17 }
  0x8e   : > { %v241_v22 = vsel %vm240_vm3, %v602_v19, %v603_v18  ;;  %v242_v23 = vsel %vm240_vm3, %v603_v18, %v602_v19 }
  0x8f   : > { %v245_v24 = vsel %vm209_vm0, %v242_v23, %v234_v20  ;;  %v246_v25 = vsel %vm210_vm1, %v241_v22, %v235_v21  ;;  %v780_v26 = vsel %vm203_vm4, %v234_v20, %v242_v23  ;;  %v784_v27 = vsel %vm204_vm5, %v235_v21, %v241_v22  ;;  %v223_v21 = vld [vmem:[%s970_s2] sm:$0xff] }
  0x90   : > { %v604_v28 = vpack.i.bf16 %v246_v25, %v245_v24  ;;  %v624_v29 = vpack.i.bf16 %v784_v27, %v780_v26 }
  0x92   : > { %605 = vrot.lane.b32.xlu1 %v604_v28, %s688_s25  ;;  %625 = vrot.lane.b32.xlu0 %v624_v29, %s688_s25 }
  0x9a   : > { %610 = vrot.lane.b32.xlu1 %v604_v28, %s689_s26 }
  0xa2   : > { %630 = vrot.lane.b32.xlu1 %v624_v29, %s689_s26 }
 0x104   : > { %v606_v31 = vpop.permute.xlu1 %605  ;;  %v626_v60 = vpop.permute.xlu0 %625 }
 0x105   : > { %v608_v39 = vunpack.i.h.bf16 %v606_v31  ;;  %v607_v40 = vunpack.i.l.bf16 %v606_v31  ;;  %v628_v6 = vunpack.i.h.bf16 %v626_v60  ;;  %v627_v7 = vunpack.i.l.bf16 %v626_v60 }
 0x107   : > { %v285_v50 = vsel %vm251_vm6, %v607_v40, %v608_v39  ;;  %v286_v52 = vsel %vm251_vm6, %v608_v39, %v607_v40  ;;  %v252_v17 = vsel %vm251_vm6, %v627_v7, %v628_v6  ;;  %v253_v18 = vsel %vm251_vm6, %v628_v6, %v627_v7 }
 0x10c   : > { %v611_v43 = vpop.permute.xlu1 %610 }
 0x10d   : > { %v613_v46 = vunpack.i.h.bf16 %v611_v43  ;;  %v612_v47 = vunpack.i.l.bf16 %v611_v43 }
 0x10f   : > { %v292_v51 = vsel %vm258_vm7, %v613_v46, %v612_v47  ;;  %v291_v53 = vsel %vm258_vm7, %v612_v47, %v613_v46 }
 0x110   : > { %v295_v54 = vsel %vm221_vm8, %v292_v51, %v285_v50  ;;  %v296_v55 = vsel %vm222_vm9, %v291_v53, %v286_v52  ;;  %v293_v62 = vsel %vm215_vm10, %v285_v50, %v292_v51  ;;  %v294_v63 = vsel %vm216_vm11, %v286_v52, %v291_v53 }
 0x111   : > { %308 = vmatpush.msra.mxu0 %v295_v54  ;;  %328 = vmatpush.msra.mxu1 %v296_v55 }
 0x113   : > { %309 = vmatpush.msra.mxu0 %v245_v24  ;;  %329 = vmatpush.msra.mxu1 %v246_v25 }
 0x114   : > { %v631_v61 = vpop.permute.xlu1 %630 }
 0x115   : > { %v633_v2 = vunpack.i.h.bf16 %v631_v61  ;;  %v632_v3 = vunpack.i.l.bf16 %v631_v61  ;;  %310 = vmatpush.msra.mxu0 %v293_v62  ;;  %330 = vmatpush.msra.mxu1 %v294_v63 }
 0x117   : > { %311 = vmatpush.msra.mxu0 %v279_v4  ;;  %331 = vmatpush.msra.mxu1 %v280_v5  ;;  %v260_v8 = vsel %vm258_vm7, %v633_v2, %v632_v3  ;;  %v259_v9 = vsel %vm258_vm7, %v632_v3, %v633_v2 }
 0x118   : > { %v263_v19 = vsel %vm221_vm8, %v260_v8, %v252_v17  ;;  %v264_v20 = vsel %vm222_vm9, %v259_v9, %v253_v18  ;;  %v261_v22 = vsel %vm215_vm10, %v252_v17, %v260_v8  ;;  %v262_v23 = vsel %vm216_vm11, %v253_v18, %v259_v9 }
 0x119   : > { %312 = vmatpush.msra.mxu0 %v731_v0  ;;  %332 = vmatpush.msra.mxu1 %v733_v1 }
 0x11b   : > { %313 = vmatpush.msra.mxu0 %v277_v15  ;;  %333 = vmatpush.msra.mxu1 %v278_v16 }
 0x11d   : > { %314 = vmatpush.msra.mxu0 %v263_v19  ;;  %334 = vmatpush.msra.mxu1 %v264_v20 }
 0x11f   : > { %315 = vmatpush.msra.mxu0 %v780_v26  ;;  %335 = vmatpush.msra.mxu1 %v784_v27 }
 0x121   : > { %316 = vmatpush.msra.mxu0 %v261_v22  ;;  %336 = vmatpush.msra.mxu1 %v262_v23 }
 0x122   : > { %574 = vmatmul.msk.f32.vlgmr.msra.gmra.mxu0 %vm297_vm12, %v223_v21  ;;  %575 = vmatmul.msk.f32.vlgmr.msra.gmra.mxu1 %vm297_vm12, %v223_v21 }
 0x19f   : > { %v318_v24 = vpop.f32.mrf.mxu0  ;;  %v338_v25 = vpop.f32.mrf.mxu1 }
 0x1a0   : > { %v341_v26 = vmul.f32 %v318_v24, %v318_v24  ;;  %v342_v27 = vmul.f32 %v338_v25, %v338_v25  ;;  %v343_v28 = vadd.f32 %v338_v25, %v318_v24 }
 0x1a2   : > { %344 = vadd.xlane.f32.xlu2 %v343_v28  ;;  %v346_v29 = vadd.f32 %v342_v27, %v341_v26 }
 0x1a4   : > { %347 = vadd.xlane.f32.xlu0 %v346_v29 }
 0x215   : > { %v345_v30 = vpop.xlane.xlu2 %344 }
 0x216   : > { %v349_v31 = vmul.f32 0.00390625, %v345_v30 }
 0x217   : > { %v348_v32 = vpop.xlane.xlu0 %347 }
 0x218   : > { %v351_v33 = vmul.f32 %v349_v31, %v349_v31  ;;  %v350_v34 = vmul.f32 0.00390625, %v348_v32  ;;  %v354_v46 = vsub.f32 %v318_v24, %v349_v31  ;;  %v355_v47 = vsub.f32 %v338_v25, %v349_v31 }
 0x21a   : > { %v352_v37 = vsub.f32 %v350_v34, %v351_v33 }
 0x21c   : > { %v353_v38 = vmax.f32 %v352_v37, 0.0 }
 0x21e   : > { %v356_v39 = vadd.f32 1e-05, %v353_v38 }
 0x220   : > { %674 = vrsqrt.f32 %v356_v39  ;;  %vm363_vm14 = vweird.f32 %v356_v39 }
 0x226   : > { %v675_v40 = vpop.eup %674 }
 0x227   : > { %v358_v41 = vmul.f32 %v675_v40, %v356_v39  ;;  %vm364_vm13 = vweird.f32 %v675_v40 }
 0x228   : > { %vm365_vm15 = vmor %vm363_vm14, %vm364_vm13 }
 0x229   : > { %v359_v42 = vmul.f32 %v675_v40, %v358_v41 }
 0x22b   : > { %v360_v43 = vmul.f32 0.5, %v359_v42 }
 0x22d   : > { %v361_v44 = vsub.f32 1.5, %v360_v43 }
 0x22f   : > { %v362_v45 = vmul.f32 %v675_v40, %v361_v44 }
 0x231   : > { %v366_v50 = vsel %vm365_vm15, %v675_v40, %v362_v45 }
 0x232   : > { %v867_v51 = vmul.f32 %v366_v50, %v354_v46  ;;  %v869_v52 = vmul.f32 %v366_v50, %v355_v47 }
 0x234   : > { %v369_v53 = vmax.f32 %v867_v51, 0.0  ;;  %v370_v54 = vmax.f32 %v869_v52, 0.0 }
 0x236   : > { %v659_v55 = vpack.i.bf16 %v370_v54, %v369_v53 }
 0x238   : > { %660 = vrot.lane.b32.xlu2 %v659_v55, %s689_s26  ;;  %635 = vrot.lane.b32.xlu1 %v659_v55, %s686_s21 }
 0x240   : > { %640 = vrot.lane.b32.xlu1 %v659_v55, %s687_s22 }
 0x292   : > { %v661_v21 = vpop.permute.xlu2 %660 }
 0x293   : > { %v663_v24 = vunpack.i.h.bf16 %v661_v21  ;;  %v662_v25 = vunpack.i.l.bf16 %v661_v21 }
 0x295   : > { %v414_v32 = vsel %vm258_vm7, %v663_v24, %v662_v25  ;;  %v413_v34 = vsel %vm258_vm7, %v662_v25, %v663_v24 }
 0x2aa   : > { %v636_v56 = vpop.permute.xlu1 %635 }
 0x2ab   : > { %v638_v57 = vunpack.i.h.bf16 %v636_v56  ;;  %v637_v58 = vunpack.i.l.bf16 %v636_v56 }
 0x2ad   : > { %v375_v62 = vsel %vm233_vm2, %v637_v58, %v638_v57  ;;  %v376_v63 = vsel %vm233_vm2, %v638_v57, %v637_v58 }
 0x2b2   : > { %v641_v59 = vpop.permute.xlu1 %640 }
 0x2b3   : > { %v643_v60 = vunpack.i.h.bf16 %v641_v59  ;;  %v642_v61 = vunpack.i.l.bf16 %v641_v59 }
 0x2b5   : > { %v381_v2 = vsel %vm240_vm3, %v642_v61, %v643_v60  ;;  %v382_v3 = vsel %vm240_vm3, %v643_v60, %v642_v61 }
 0x2b6   : > { %v385_v4 = vsel %vm209_vm0, %v382_v3, %v375_v62  ;;  %v386_v5 = vsel %vm210_vm1, %v381_v2, %v376_v63  ;;  %v383_v6 = vsel %vm203_vm4, %v375_v62, %v382_v3  ;;  %v384_v7 = vsel %vm204_vm5, %v376_v63, %v381_v2 }
 0x2b7   : > { %v644_v8 = vpack.i.bf16 %v386_v5, %v385_v4  ;;  %v669_v9 = vpack.i.bf16 %v384_v7, %v383_v6 }
 0x2b9   : > { %645 = vrot.lane.b32.xlu1 %v644_v8, %s688_s25  ;;  %670 = vrot.lane.b32.xlu0 %v669_v9, %s689_s26 }
 0x2c1   : > { %650 = vrot.lane.b32.xlu1 %v644_v8, %s689_s26 }
 0x2c9   : > { %655 = vrot.lane.b32.xlu1 %v659_v55, %s688_s25  ;;  %v224_v55 = vld [vmem:[%s971_s3] sm:$0xff] }
 0x2d1   : > { %665 = vrot.lane.b32.xlu1 %v669_v9, %s688_s25 }
 0x32b   : > { %v646_v10 = vpop.permute.xlu1 %645  ;;  %v671_v37 = vpop.permute.xlu0 %670 }
 0x32c   : > { %v648_v11 = vunpack.i.h.bf16 %v646_v10  ;;  %v647_v15 = vunpack.i.l.bf16 %v646_v10  ;;  %v673_v40 = vunpack.i.h.bf16 %v671_v37  ;;  %v672_v41 = vunpack.i.l.bf16 %v671_v37 }
 0x32e   : > { %v423_v14 = vsel %vm251_vm6, %v647_v15, %v648_v11  ;;  %v424_v19 = vsel %vm251_vm6, %v648_v11, %v647_v15  ;;  %v398_v50 = vsel %vm258_vm7, %v673_v40, %v672_v41  ;;  %v397_v52 = vsel %vm258_vm7, %v672_v41, %v673_v40 }
 0x333   : > { %v651_v13 = vpop.permute.xlu1 %650 }
 0x334   : > { %v653_v16 = vunpack.i.h.bf16 %v651_v13  ;;  %v652_v17 = vunpack.i.l.bf16 %v651_v13 }
 0x336   : > { %v430_v18 = vsel %vm258_vm7, %v653_v16, %v652_v17  ;;  %v429_v20 = vsel %vm258_vm7, %v652_v17, %v653_v16 }
 0x337   : > { %v433_v22 = vsel %vm221_vm8, %v430_v18, %v423_v14  ;;  %v434_v23 = vsel %vm222_vm9, %v429_v20, %v424_v19  ;;  %v431_v27 = vsel %vm215_vm10, %v423_v14, %v430_v18  ;;  %v432_v28 = vsel %vm216_vm11, %v424_v19, %v429_v20 }
 0x338   : > { %445 = vmatpush.msra.mxu2 %v433_v22  ;;  %465 = vmatpush.msra.mxu3 %v434_v23 }
 0x33a   : > { %446 = vmatpush.msra.mxu2 %v385_v4  ;;  %466 = vmatpush.msra.mxu3 %v386_v5 }
 0x33b   : > { %v656_v26 = vpop.permute.xlu1 %655 }
 0x33c   : > { %v658_v29 = vunpack.i.h.bf16 %v656_v26  ;;  %v657_v30 = vunpack.i.l.bf16 %v656_v26  ;;  %447 = vmatpush.msra.mxu2 %v431_v27  ;;  %467 = vmatpush.msra.mxu3 %v432_v28 }
 0x33e   : > { %v407_v31 = vsel %vm251_vm6, %v657_v30, %v658_v29  ;;  %v408_v33 = vsel %vm251_vm6, %v658_v29, %v657_v30 }
 0x33f   : > { %v417_v38 = vsel %vm221_vm8, %v414_v32, %v407_v31  ;;  %v418_v39 = vsel %vm222_vm9, %v413_v34, %v408_v33  ;;  %v415_v43 = vsel %vm215_vm10, %v407_v31, %v414_v32  ;;  %v416_v44 = vsel %vm216_vm11, %v408_v33, %v413_v34 }
 0x340   : > { %448 = vmatpush.msra.mxu2 %v417_v38  ;;  %468 = vmatpush.msra.mxu3 %v418_v39 }
 0x342   : > { %449 = vmatpush.msra.mxu2 %v369_v53  ;;  %469 = vmatpush.msra.mxu3 %v370_v54 }
 0x343   : > { %v666_v42 = vpop.permute.xlu1 %665 }
 0x344   : > { %v668_v45 = vunpack.i.h.bf16 %v666_v42  ;;  %v667_v46 = vunpack.i.l.bf16 %v666_v42  ;;  %450 = vmatpush.msra.mxu2 %v415_v43  ;;  %470 = vmatpush.msra.mxu3 %v416_v44 }
 0x346   : > { %v391_v47 = vsel %vm251_vm6, %v667_v46, %v668_v45  ;;  %v392_v51 = vsel %vm251_vm6, %v668_v45, %v667_v46 }
 0x347   : > { %v401_v53 = vsel %vm221_vm8, %v398_v50, %v391_v47  ;;  %v402_v54 = vsel %vm222_vm9, %v397_v52, %v392_v51  ;;  %v399_v56 = vsel %vm215_vm10, %v391_v47, %v398_v50  ;;  %v400_v12 = vsel %vm216_vm11, %v392_v51, %v397_v52 }
 0x348   : > { %451 = vmatpush.msra.mxu2 %v401_v53  ;;  %471 = vmatpush.msra.mxu3 %v402_v54 }
 0x34a   : > { %452 = vmatpush.msra.mxu2 %v383_v6  ;;  %472 = vmatpush.msra.mxu3 %v384_v7 }
 0x34c   : > { %453 = vmatpush.msra.mxu2 %v399_v56  ;;  %473 = vmatpush.msra.mxu3 %v400_v12 }
 0x34d   : > { %576 = vmatmul.msk.f32.vlgmr.msra.gmra.mxu2 %vm297_vm12, %v224_v55  ;;  %577 = vmatmul.msk.f32.vlgmr.msra.gmra.mxu3 %vm297_vm12, %v224_v55 }
 0x3d0   : > { %v455_v35 = vpop.f32.mrf.mxu2  ;;  %v475_v36 = vpop.f32.mrf.mxu3 }
 0x3d1   : > { %v478_v57 = vmul.f32 %v455_v35, %v455_v35  ;;  %v479_v58 = vmul.f32 %v475_v36, %v475_v36  ;;  %v480_v59 = vadd.f32 %v475_v36, %v455_v35 }
 0x3d3   : > { %481 = vadd.xlane.f32.xlu1 %v480_v59  ;;  %v483_v60 = vadd.f32 %v479_v58, %v478_v57 }
 0x3d5   : > { %484 = vadd.xlane.f32.xlu2 %v483_v60 }
 0x446   : > { %v482_v61 = vpop.xlane.xlu1 %481 }
 0x447   : > { %v486_v48 = vmul.f32 0.00390625, %v482_v61 }
 0x448   : > { %v485_v62 = vpop.xlane.xlu2 %484 }
 0x449   : > { %v488_v63 = vmul.f32 %v486_v48, %v486_v48  ;;  %v487_v49 = vmul.f32 0.00390625, %v485_v62  ;;  %v491_v11 = vsub.f32 %v455_v35, %v486_v48  ;;  %v492_v15 = vsub.f32 %v475_v36, %v486_v48 }
 0x44b   : > { %v489_v2 = vsub.f32 %v487_v49, %v488_v63 }
 0x44d   : > { %v490_v3 = vmax.f32 %v489_v2, 0.0 }
 0x44f   : > { %v493_v4 = vadd.f32 1e-05, %v490_v3 }
 0x451   : > { %676 = vrsqrt.f32 %v493_v4  ;;  %vm500_vm1 = vweird.f32 %v493_v4 }
 0x457   : > { %v677_v5 = vpop.eup %676 }
 0x458   : > { %v495_v6 = vmul.f32 %v677_v5, %v493_v4  ;;  %vm501_vm0 = vweird.f32 %v677_v5 }
 0x459   : > { %vm502_vm2 = vmor %vm500_vm1, %vm501_vm0 }
 0x45a   : > { %v496_v7 = vmul.f32 %v677_v5, %v495_v6 }
 0x45c   : > { %v497_v8 = vmul.f32 0.5, %v496_v7 }
 0x45e   : > { %v498_v9 = vsub.f32 1.5, %v497_v8 }
 0x460   : > { %v499_v10 = vmul.f32 %v677_v5, %v498_v9 }
 0x462   : > { %v503_v13 = vsel %vm502_vm2, %v677_v5, %v499_v10 }
 0x463   : > { %v504_v16 = vmul.f32 %v503_v13, %v491_v11  ;;  %v505_v17 = vmul.f32 %v503_v13, %v492_v15 }
 0x465   : > { %v506_v14 = vadd.f32 %v504_v16, %v731_v0  ;;  %v507_v18 = vadd.f32 %v505_v17, %v733_v1 }
 0x467   : > { %508 = vst [vmem:[%s197_s7] sm:$0xff] %v506_v14 }
 0x468   : > { %509 = vst [vmem:[%s197_s7 + $0x8] sm:$0xff] %v507_v18 }
 0x469 PF: > { %s14_s15 = sadd.s32 1, %s684_s15  }
 0x46a   : > { %p11_p4 = scmp.ge.s32.totalorder %s14_s15, 4  }
 0x46c   :  { %13 = sbr.rel (!%p11_p4) target bundleno = 1 (0x1), region = 66 }

</bundles_post_ra>
